<compile_context>
chip_gen: v5e
topology: v5e:2x2
jax: 0.10.0
libtpu: 0.0.40
codegen_flags: <defaults>
</compile_context>

<pallas_src>
import jax
import jax.numpy as jnp
from jax.experimental import pallas as pl
from jax.experimental.pallas import tpu as pltpu


def _lan_kernel(x_ref, phi_ref, o_ref):
    # x_ref / o_ref: (TB, TN) tile of the flattened activations.
    # phi_ref:       (1, TN) tile of the raw phi parameter (broadcast over rows).
    # tanh is computed in f32 (v5e has no bf16 EUP) on a single row per tile,
    # then cast back so the bulk add runs as a plain VPU add in x's dtype.
    t = jnp.tanh(phi_ref[...].astype(jnp.float32)).astype(x_ref.dtype)
    o_ref[...] = x_ref[...] + t


def _pick_lane_tile(F):
    # Largest 128-multiple lane tile; prefer one that divides F exactly so every
    # store is a full unmasked vst.
    if F <= 128:
        return F  # full array dim is always a legal block extent
    for cand in (4096, 2048, 1024, 512, 256, 128):
        if F % cand == 0:
            return cand
    # No exact divisor: take a large tile and let Pallas mask the last block.
    f_padded = ((F + 127) // 128) * 128
    for cand in (2048, 1024, 512, 256, 128):
        if cand <= f_padded:
            return cand
    return 128


def _pick_batch_tile(B, TN, itemsize, budget_bytes=8 * 1024 * 1024):
    # (8,128) rule: second-to-last block dim must be a multiple of 8 or equal
    # the full array dim. Halve only while it stays a multiple of 8 and the
    # double-buffered blocks (2 bufs each for x and out) + phi row exceed the
    # budget (conservative: fits v5e's 16 MiB scoped default with headroom).
    if B < 8 or B % 8 != 0:
        return B
    tb = B
    while tb % 16 == 0 and (2 * 2 * tb * TN + 2 * TN) * itemsize > budget_bytes:
        tb //= 2
    return tb


def lan_forward(x, phi):
    B = x.shape[0]
    assert x.shape[1:] == phi.shape, "phi must match x's per-sample shape"

    F = 1
    for d in phi.shape:
        F *= d

    # Lane-dense flat views: contiguous reshapes, no HBM copies.
    x_flat = x.reshape(B, F)
    phi_flat = phi.reshape(1, F)

    TN = _pick_lane_tile(F)
    TB = _pick_batch_tile(B, TN, jnp.dtype(x.dtype).itemsize)

    out_flat = pl.pallas_call(
        _lan_kernel,
        out_shape=jax.ShapeDtypeStruct((B, F), x.dtype),
        grid_spec=pltpu.PrefetchScalarGridSpec(
            num_scalar_prefetch=0,
            grid=(pl.cdiv(B, TB), pl.cdiv(F, TN)),
            in_specs=[
                pl.BlockSpec((TB, TN), lambda i, j: (i, j)),
                pl.BlockSpec((1, TN), lambda i, j: (0, j)),  # resident along i
            ],
            out_specs=pl.BlockSpec((TB, TN), lambda i, j: (i, j)),
        ),
        compiler_params=pltpu.CompilerParams(
            dimension_semantics=("parallel", "parallel"),
            vmem_limit_bytes=32 * 1024 * 1024,
        ),
    )(x_flat, phi_flat)

    return out_flat.reshape(x.shape)


if __name__ == "__main__":
    key = jax.random.PRNGKey(0)
    kx, kphi = jax.random.split(key)

    B, C, H, W = 2, 4, 16, 16
    x = jax.random.normal(kx, (B, C, H, W), dtype=jnp.float32)

    # Module __init__ uses zeros(shape); init deterministically non-zero so the
    # tanh + add path is actually exercised (shape = (C, H, W), broadcast over batch).
    phi = 0.1 * jax.random.normal(kphi, (C, H, W), dtype=jnp.float32)

    out = lan_forward(x, phi)
    out = jax.block_until_ready(out)

    ref = x + jnp.tanh(phi)[None]
    assert out.shape == x.shape
    assert jnp.allclose(out, ref, atol=1e-6), "mismatch vs reference"

    print("KERNEL_OK")
</pallas_src>

<mosaic_0001>
module attributes {stable_mosaic.version = 11 : i64} {
  func.func @_lan_kernel(%arg0: i32, %arg1: i32, %arg2: memref<2x1024xf32, #tpu.memory_space<vmem>>, %arg3: memref<1x1024xf32, #tpu.memory_space<vmem>>, %arg4: memref<2x1024xf32, #tpu.memory_space<vmem>>) attributes {dimension_semantics = [#tpu.dimension_semantics<parallel>, #tpu.dimension_semantics<parallel>], iteration_bounds = array<i64: 1, 1>, scalar_prefetch = 0 : i64, scratch_operands = 0 : i64, tpu.core_type = #tpu.core_type<tc>, window_params = [{transform_indices = @transform_0, window_bounds = array<i64: 2, 1024>}, {transform_indices = @transform_1, window_bounds = array<i64: 1, 1024>}, {transform_indices = @transform_2, window_bounds = array<i64: 2, 1024>}]} {
    %c0 = arith.constant 0 : index
    %c0_0 = arith.constant 0 : index
    %0 = vector.load %arg3[%c0, %c0_0] : memref<1x1024xf32, #tpu.memory_space<vmem>>, vector<1x1024xf32>
    %1 = math.tanh %0 : vector<1x1024xf32>
    %c0_1 = arith.constant 0 : index
    %c0_2 = arith.constant 0 : index
    %2 = vector.load %arg2[%c0_1, %c0_2] : memref<2x1024xf32, #tpu.memory_space<vmem>>, vector<2x1024xf32>
    %3 = vector.broadcast %1 : vector<1x1024xf32> to vector<2x1024xf32>
    %4 = arith.addf %2, %3 : vector<2x1024xf32>
    %c0_3 = arith.constant 0 : index
    %c0_4 = arith.constant 0 : index
    %5 = vector.load %arg4[%c0_3, %c0_4] : memref<2x1024xf32, #tpu.memory_space<vmem>>, vector<2x1024xf32>
    tpu.vector_store %arg4[%c0_3, %c0_4], %4 {strides = array<i32>} : memref<2x1024xf32, #tpu.memory_space<vmem>>, vector<2x1024xf32>,
    return
  }
  func.func @transform_0(%arg0: i32, %arg1: i32) -> (i32, i32) {
    %c0_i32 = arith.constant 0 : i32
    return %arg0, %arg1 : i32, i32
  }
  func.func @transform_1(%arg0: i32, %arg1: i32) -> (i32, i32) {
    %c0_i32 = arith.constant 0 : i32
    %c0_i32_0 = arith.constant 0 : i32
    return %c0_i32, %arg1 : i32, i32
  }
  func.func @transform_2(%arg0: i32, %arg1: i32) -> (i32, i32) {
    %c0_i32 = arith.constant 0 : i32
    return %arg0, %arg1 : i32, i32
  }
}

</mosaic_0001>

<bundles_post_ra>
// kernel: tpu_custom_call.1
= control target key start
LH: loop header
LB: loop body
LE: loop exit
PB: predicated region body
PF: predicated region fallthrough
CT: control target
= control target key end

     0   :  { %7 = vsyncpa [#allocation3], 0  ;;  %s206_s0 = inlined_call_operand.hbm [shape: f32[2,1024], index: 0, kind: input, shape index: {}]   ;;  %s207_s1 = inlined_call_operand.hbm [shape: f32[1,1024], index: 1, kind: input, shape index: {}]   ;;  %s208_s2 = inlined_call_operand.hbm [shape: f32[2,1024], index: 2, kind: output, shape index: {}]  }
   0x1   :  { %8 = vsyncpa [#allocation6], 0 }
   0x2   :  { %9 = vsyncpa [#allocation4], 0  ;;  %s15_s11 = sshll.u32 %s206_s0, 4  ;;  %s175_s12 = smov [#allocation2]   ;;  %s16_s11 = int_to_ptr.hbm [resolvable:$true] %s15_s11 }
   0x3   :  { %s17_s13 = sshll.u32 %s175_s12, 4  ;;  %s26_s16 = sshll.u32 %s207_s1, 4  ;;  %s18_s13 = int_to_ptr.vmem [resolvable:$true] %s17_s13  ;;  %s27_s16 = int_to_ptr.hbm [resolvable:$true] %s26_s16 }
   0x4   :  { %20 = dma.hbm_to_vmem [thread:$0]  %s16_s11, 256, %s18_s13, [#allocation3]  }
   0x5   :  { %s176_s17 = smov [#allocation5]  }
   0x6   :  { %s28_s18 = sshll.u32 %s176_s17, 4  ;;  %s29_s18 = int_to_ptr.vmem [resolvable:$true] %s28_s18 }
   0x7   :  { %31 = dma.hbm_to_vmem [thread:$0]  %s27_s16, 128, %s29_s18, [#allocation6]  }
   0x8   :  { %169 = dma.done.wait [#allocation3], 256  }
   0x9   :  { %170 = vsyncadd [#allocation3], 4294967040 }
   0xa   :  { %171 = dma.done.wait [#allocation6], 128  }
   0xb   :  { %172 = vsyncadd [#allocation6], 4294967168  ;;  %v40_v0 = vld [vmem:[#allocation5] sm:$0xff]  ;;  %vm59_vm0 = vcmask 1041408   ;;  %vm61_vm1 = vcmask 1045508   ;;  %vm63_vm2 = vcmask 1043456  }
   0xc   :  { %95 = vtanh.f32 %v40_v0  ;;  %v42_v13 = vld [vmem:[#allocation2] sm:$0xff]  ;;  %v43_v19 = vld [vmem:[#allocation2 + $0x8] sm:$0xff]  ;;  %s177_s0 = smov [#allocation7]   ;;  %s81_s21 = sshll.u32 %s208_s2, 4  ;;  %s82_s21 = int_to_ptr.hbm [resolvable:$true] %s81_s21 }
   0xd   :  { %s79_s1 = sshll.u32 %s177_s0, 4  ;;  %s80_s1 = int_to_ptr.vmem [resolvable:$true] %s79_s1 }
  0x12   :  { %v96_v1 = vpop.eup %95 }
  0x13   :  { %v45_v2 = vperm.slane %v96_v1, 0  ;;  %v46_v3 = vperm.slane %v96_v1, 1  ;;  %v47_v4 = vperm.slane %v96_v1, 2  ;;  %v48_v5 = vperm.slane %v96_v1, 3 }
  0x14   :  { %v49_v6 = vperm.slane %v96_v1, 4  ;;  %v50_v7 = vperm.slane %v96_v1, 5  ;;  %v51_v8 = vperm.slane %v96_v1, 6  ;;  %v52_v9 = vperm.slane %v96_v1, 7 }
  0x15   :  { %v53_v10 = vrot.slane %v46_v3, 6  ;;  %v54_v11 = vrot.slane %v47_v4, 4  ;;  %v55_v12 = vrot.slane %v48_v5, 2 }
  0x16   :  { %v56_v14 = vrot.slane %v50_v7, 6  ;;  %v57_v15 = vrot.slane %v51_v8, 4  ;;  %v58_v16 = vrot.slane %v52_v9, 2 }
  0x17   :  { %v60_v17 = vsel %vm59_vm0, %v45_v2, %v53_v10  ;;  %v62_v18 = vsel %vm61_vm1, %v54_v11, %v55_v12 }
  0x18   :  { %v64_v20 = vsel %vm63_vm2, %v60_v17, %v62_v18  ;;  %v65_v21 = vsel %vm59_vm0, %v49_v6, %v56_v14  ;;  %v66_v22 = vsel %vm61_vm1, %v57_v15, %v58_v16 }
  0x19   :  { %v70_v23 = vadd.f32 %v64_v20, %v42_v13  ;;  %v67_v24 = vsel %vm63_vm2, %v65_v21, %v66_v22 }
  0x1a   :  { %v71_v25 = vadd.f32 %v67_v24, %v43_v19 }
  0x1b   :  { %72 = vst [vmem:[#allocation7] sm:$0xff] %v70_v23 }
  0x1c   :  { %73 = vst [vmem:[#allocation7 + $0x8] sm:$0xff] %v71_v25 }
  0x1d   :  { %84 = dma.vmem_to_hbm [thread:$0]  %s80_s1, 256, %s82_s21, [#allocation4]  }
  0x1e   :  { %173 = dma.done.wait [#allocation4], 256  }
  0x1f   :  { %174 = vsyncadd [#allocation4], 4294967040 }
  0x20   :  { %89 = vsyncpa [#allocation3], 1 }
  0x21   :  { %90 = vsyncpa [#allocation6], 1 }
  0x22   :  { %91 = vsyncpa [#allocation4], 1 }

</bundles_post_ra>
